<compile_context>
chip_gen: v5e
topology: v5e:2x2
jax: 0.10.0
libtpu: 0.0.40
codegen_flags: <defaults>
</compile_context>

<pallas_src>
import functools

import jax
import jax.numpy as jnp
from jax.experimental import pallas as pl
from jax.experimental.pallas import tpu as pltpu


# ----------------------------------------------------------------------------
# Fused path: whole image(s) per block (pool + excite + rescale in one kernel).
# ----------------------------------------------------------------------------
def _se_fused_kernel(x_ref, w1t_ref, w2t_ref, o_ref, *, inv_hw):
    # x_ref: (nb, C, HW)   w1t_ref: (C, r)   w2t_ref: (r, C)
    # --- squeeze: global average pool (f32 accumulate) ----------------------
    pooled = jnp.sum(x_ref[...].astype(jnp.float32), axis=-1) * inv_hw   # (nb, C)

    # --- excite: two tiny FCs on the MXU ------------------------------------
    f1 = jnp.dot(pooled, w1t_ref[...].astype(jnp.float32),
                 preferred_element_type=jnp.float32)                     # (nb, r)
    f1 = jnp.maximum(f1, 0.0)                                            # ReLU
    f2 = jnp.dot(f1, w2t_ref[...].astype(jnp.float32),
                 preferred_element_type=jnp.float32)                     # (nb, C)
    # Hardsigmoid (PyTorch): clip(x/6 + 1/2, 0, 1)
    scale = jnp.clip(f2 * (1.0 / 6.0) + 0.5, 0.0, 1.0)                   # (nb, C)

    # --- rescale in the input's native dtype ---------------------------------
    out = x_ref[...] * scale[:, :, None].astype(x_ref.dtype)
    o_ref[...] = out.astype(o_ref.dtype)


# ----------------------------------------------------------------------------
# Fallback path A: pool + excite, HW tiled with an f32 accumulator.
# ----------------------------------------------------------------------------
def _pool_excite_kernel(x_ref, w1t_ref, w2t_ref, scale_ref, acc_ref, *,
                        hw_true, hw_tile, needs_mask):
    # x_ref: (1, C, hw_tile)  scale_ref: (1, C, 1)  acc_ref: (1, C) f32 scratch
    h = pl.program_id(1)

    @pl.when(h == 0)
    def _():
        acc_ref[...] = jnp.zeros_like(acc_ref)

    x = x_ref[...].astype(jnp.float32)                        # (1, C, hw_tile)
    if needs_mask:
        col = jax.lax.broadcasted_iota(jnp.int32, x.shape, dimension=2)
        x = jnp.where(col + h * hw_tile < hw_true, x, 0.0)
    acc_ref[...] += jnp.sum(x, axis=-1)                        # (1, C)

    @pl.when(h == pl.num_programs(1) - 1)
    def _():
        pooled = acc_ref[...] * (1.0 / float(hw_true))         # (1, C)
        f1 = jnp.maximum(
            jnp.dot(pooled, w1t_ref[...].astype(jnp.float32),
                    preferred_element_type=jnp.float32), 0.0)  # (1, r)
        f2 = jnp.dot(f1, w2t_ref[...].astype(jnp.float32),
                     preferred_element_type=jnp.float32)       # (1, C)
        scale = jnp.clip(f2 * (1.0 / 6.0) + 0.5, 0.0, 1.0)
        scale_ref[...] = scale[:, :, None]                     # (1, C, 1)


# ----------------------------------------------------------------------------
# Fallback path B: rescale, freely HW tiled.
# ----------------------------------------------------------------------------
def _rescale_kernel(x_ref, scale_ref, o_ref):
    # x_ref: (1, C, hw_tile)  scale_ref: (1, C, 1)
    s = scale_ref[...].astype(x_ref.dtype)
    o_ref[...] = (x_ref[...] * s).astype(o_ref.dtype)


def _pick_batch_block(n, bytes_per_image, budget):
    """Largest divisor of n fitting the block budget; grid >= 2 when n >= 2."""
    nb_cap = max(1, int(budget // max(1, bytes_per_image)))
    if n >= 2:
        nb_cap = min(nb_cap, n // 2)   # keep both v7x TensorCores busy
    nb_cap = max(1, min(nb_cap, n))
    for nb in range(nb_cap, 0, -1):
        if n % nb == 0:
            return nb
    return 1


_VMEM_LIMIT = 48 * 1024 * 1024   # safe on v5e/v6e (128 MiB) and v7x (64 MiB/TC)


def se_block(x_nchw, w1, w2, *, max_block_bytes=8 * 1024 * 1024):
    """x_nchw: (N, C, H, W); w1: (r, C); w2: (C, r). Returns (N, C, H, W)."""
    N, C, H, W = x_nchw.shape
    r = w1.shape[0]
    HW = H * W

    x3 = x_nchw.reshape(N, C, HW)
    w1t = jnp.transpose(w1)        # (C, r) -- pre-transposed for the MXU
    w2t = jnp.transpose(w2)        # (r, C)

    itemsize = x3.dtype.itemsize
    bytes_per_image = C * HW * itemsize

    # ------------------------------------------------------------------ fused
    if bytes_per_image <= max_block_bytes:
        nb = _pick_batch_block(N, bytes_per_image, max_block_bytes)
        out3 = pl.pallas_call(
            functools.partial(_se_fused_kernel, inv_hw=1.0 / float(HW)),
            out_shape=jax.ShapeDtypeStruct((N, C, HW), x3.dtype),
            grid_spec=pltpu.PrefetchScalarGridSpec(
                num_scalar_prefetch=0,
                grid=(N // nb,),
                in_specs=[
                    pl.BlockSpec((nb, C, HW), lambda i: (i, 0, 0)),  # x block
                    pl.BlockSpec((C, r), lambda i: (0, 0)),          # W1^T resident
                    pl.BlockSpec((r, C), lambda i: (0, 0)),          # W2^T resident
                ],
                out_specs=pl.BlockSpec((nb, C, HW), lambda i: (i, 0, 0)),
            ),
            compiler_params=pltpu.CompilerParams(
                dimension_semantics=("parallel",),
                vmem_limit_bytes=_VMEM_LIMIT),
        )(x3, w1t, w2t)
        return out3.reshape(N, C, H, W)

    # --------------------------------------------------------------- fallback
    # Image too large for one block: two passes, HW tiled in lane-dense chunks.
    hw_tile = max(128, (max_block_bytes // (C * itemsize)) // 128 * 128)
    hw_tile = min(hw_tile, ((HW + 127) // 128) * 128)
    n_hw = pl.cdiv(HW, hw_tile)
    needs_mask = (n_hw * hw_tile != HW)

    scale = pl.pallas_call(
        functools.partial(_pool_excite_kernel, hw_true=HW,
                          hw_tile=hw_tile, needs_mask=needs_mask),
        out_shape=jax.ShapeDtypeStruct((N, C, 1), jnp.float32),
        grid_spec=pltpu.PrefetchScalarGridSpec(
            num_scalar_prefetch=0,
            grid=(N, n_hw),
            in_specs=[
                pl.BlockSpec((1, C, hw_tile), lambda n, h: (n, 0, h)),
                pl.BlockSpec((C, r), lambda n, h: (0, 0)),
                pl.BlockSpec((r, C), lambda n, h: (0, 0)),
            ],
            out_specs=pl.BlockSpec((1, C, 1), lambda n, h: (n, 0, 0)),
            scratch_shapes=[pltpu.VMEM((1, C), jnp.float32)],
        ),
        compiler_params=pltpu.CompilerParams(
            dimension_semantics=("parallel", "arbitrary"),
            vmem_limit_bytes=_VMEM_LIMIT),
    )(x3, w1t, w2t)

    out3 = pl.pallas_call(
        _rescale_kernel,
        out_shape=jax.ShapeDtypeStruct((N, C, HW), x3.dtype),
        grid_spec=pltpu.PrefetchScalarGridSpec(
            num_scalar_prefetch=0,
            grid=(N, n_hw),
            in_specs=[
                pl.BlockSpec((1, C, hw_tile), lambda n, h: (n, 0, h)),
                pl.BlockSpec((1, C, 1), lambda n, h: (n, 0, 0)),
            ],
            out_specs=pl.BlockSpec((1, C, hw_tile), lambda n, h: (n, 0, h)),
        ),
        compiler_params=pltpu.CompilerParams(
            dimension_semantics=("parallel", "parallel"),
            vmem_limit_bytes=_VMEM_LIMIT),
    )(x3, scale)
    return out3.reshape(N, C, H, W)


def _reference(x, w1, w2):
    pooled = jnp.mean(x, axis=(2, 3))                                    # (N, C)
    f1 = jnp.maximum(
        jnp.dot(pooled, w1.T, precision=jax.lax.Precision.HIGHEST), 0.0)  # (N, r)
    f2 = jnp.clip(
        jnp.dot(f1, w2.T, precision=jax.lax.Precision.HIGHEST) / 6.0 + 0.5,
        0.0, 1.0)                                                        # (N, C)
    return x * f2[:, :, None, None]


if __name__ == "__main__":
    key = jax.random.PRNGKey(0)
    k = jax.random.split(key, 9)

    # Case 1: HW multiple of 128, fused path, grid of 2 batch blocks.
    N, C, H, W = 2, 8, 16, 16
    r = C // 4
    x = jax.random.normal(k[0], (N, C, H, W), dtype=jnp.float32)
    w1 = jax.random.normal(k[1], (r, C), dtype=jnp.float32) * 0.3
    w2 = jax.random.normal(k[2], (C, r), dtype=jnp.float32) * 0.3
    out = jax.block_until_ready(se_block(x, w1, w2))
    ref = _reference(x, w1, w2)
    assert out.shape == x.shape
    assert jnp.allclose(out, ref, atol=1e-3, rtol=1e-3), "mismatch (case 1)"

    # Case 2: ragged HW (7x7 = 49), fused path, full-extent (non-128) last dim.
    N2, C2, H2, W2 = 3, 16, 7, 7
    r2 = C2 // 4
    x2 = jax.random.normal(k[3], (N2, C2, H2, W2), dtype=jnp.float32)
    w1b = jax.random.normal(k[4], (r2, C2), dtype=jnp.float32) * 0.3
    w2b = jax.random.normal(k[5], (C2, r2), dtype=jnp.float32) * 0.3
    out2 = jax.block_until_ready(se_block(x2, w1b, w2b))
    ref2 = _reference(x2, w1b, w2b)
    assert out2.shape == x2.shape
    assert jnp.allclose(out2, ref2, atol=1e-3, rtol=1e-3), "mismatch (case 2)"

    # Case 3: force the two-kernel fallback (HW-tiled pool + rescale) by
    # shrinking the block budget; exercises partial-tile masking (576 % 256).
    N3, C3, H3, W3 = 2, 8, 24, 24
    r3 = C3 // 4
    x3 = jax.random.normal(k[6], (N3, C3, H3, W3), dtype=jnp.float32)
    w1c = jax.random.normal(k[7], (r3, C3), dtype=jnp.float32) * 0.3
    w2c = jax.random.normal(k[8], (C3, r3), dtype=jnp.float32) * 0.3
    out3 = jax.block_until_ready(se_block(x3, w1c, w2c, max_block_bytes=8192))
    ref3 = _reference(x3, w1c, w2c)
    assert out3.shape == x3.shape
    assert jnp.allclose(out3, ref3, atol=1e-3, rtol=1e-3), "mismatch (case 3)"

    print("KERNEL_OK")
</pallas_src>

<mosaic_0001>
module attributes {stable_mosaic.version = 11 : i64} {
  func.func @_se_fused_kernel(%arg0: i32, %arg1: memref<1x8x256xf32, #tpu.memory_space<vmem>>, %arg2: memref<8x2xf32, #tpu.memory_space<vmem>>, %arg3: memref<2x8xf32, #tpu.memory_space<vmem>>, %arg4: memref<1x8x256xf32, #tpu.memory_space<vmem>>) attributes {dimension_semantics = [#tpu.dimension_semantics<parallel>], iteration_bounds = array<i64: 2>, scalar_prefetch = 0 : i64, scratch_operands = 0 : i64, tpu.core_type = #tpu.core_type<tc>, window_params = [{transform_indices = @transform_0, window_bounds = array<i64: 1, 8, 256>}, {pipeline_mode = #tpu.pipeline_mode<synchronous>, transform_indices = @transform_1, window_bounds = array<i64: 8, 2>}, {pipeline_mode = #tpu.pipeline_mode<synchronous>, transform_indices = @transform_2, window_bounds = array<i64: 2, 8>}, {transform_indices = @transform_3, window_bounds = array<i64: 1, 8, 256>}]} {
    %c0 = arith.constant 0 : index
    %c0_0 = arith.constant 0 : index
    %c0_1 = arith.constant 0 : index
    %0 = vector.load %arg1[%c0, %c0_0, %c0_1] : memref<1x8x256xf32, #tpu.memory_space<vmem>>, vector<1x8x256xf32>
    %cst = arith.constant dense<0.000000e+00> : vector<1x8xf32>
    %1 = vector.multi_reduction <add>, %0, %cst [2] : vector<1x8x256xf32> to vector<1x8xf32>
    %cst_2 = arith.constant 3.906250e-03 : f32
    %2 = vector.broadcast %cst_2 : f32 to vector<1x8xf32>
    %3 = arith.mulf %1, %2 : vector<1x8xf32>
    %c0_3 = arith.constant 0 : index
    %c0_4 = arith.constant 0 : index
    %4 = vector.load %arg2[%c0_3, %c0_4] : memref<8x2xf32, #tpu.memory_space<vmem>>, vector<8x2xf32>
    %cst_5 = arith.constant dense<0.000000e+00> : vector<1x2xf32>
    %5 = tpu.matmul %3, %4, %cst_5 {dimension_numbers = #tpu.dot_dimension_numbers<[1], [0], [0], [1], [0, 0, 1, 1], [], []>} : vector<1x8xf32>, vector<8x2xf32>, vector<1x2xf32> -> vector<1x2xf32>
    %cst_6 = arith.constant 0.000000e+00 : f32
    %6 = vector.broadcast %cst_6 : f32 to vector<1x2xf32>
    %7 = arith.maximumf %5, %6 : vector<1x2xf32>
    %c0_7 = arith.constant 0 : index
    %c0_8 = arith.constant 0 : index
    %8 = vector.load %arg3[%c0_7, %c0_8] : memref<2x8xf32, #tpu.memory_space<vmem>>, vector<2x8xf32>
    %cst_9 = arith.constant dense<0.000000e+00> : vector<1x8xf32>
    %9 = tpu.matmul %7, %8, %cst_9 {dimension_numbers = #tpu.dot_dimension_numbers<[1], [0], [0], [1], [0, 0, 1, 1], [], []>} : vector<1x2xf32>, vector<2x8xf32>, vector<1x8xf32> -> vector<1x8xf32>
    %cst_10 = arith.constant 0.166666672 : f32
    %10 = vector.broadcast %cst_10 : f32 to vector<1x8xf32>
    %11 = arith.mulf %9, %10 : vector<1x8xf32>
    %cst_11 = arith.constant 5.000000e-01 : f32
    %12 = vector.broadcast %cst_11 : f32 to vector<1x8xf32>
    %13 = arith.addf %11, %12 : vector<1x8xf32>
    %cst_12 = arith.constant 0.000000e+00 : f32
    %cst_13 = arith.constant 1.000000e+00 : f32
    %14 = vector.broadcast %cst_12 : f32 to vector<1x8xf32>
    %15 = arith.maximumf %14, %13 : vector<1x8xf32>
    %16 = vector.broadcast %cst_13 : f32 to vector<1x8xf32>
    %17 = arith.minimumf %16, %15 : vector<1x8xf32>
    %c0_14 = arith.constant 0 : index
    %c0_15 = arith.constant 0 : index
    %c0_16 = arith.constant 0 : index
    %18 = vector.load %arg1[%c0_14, %c0_15, %c0_16] : memref<1x8x256xf32, #tpu.memory_space<vmem>>, vector<1x8x256xf32>
    %19 = vector.shape_cast %17 : vector<1x8xf32> to vector<1x8x1xf32>
    %20 = vector.broadcast %19 : vector<1x8x1xf32> to vector<1x8x256xf32>
    %21 = arith.mulf %18, %20 : vector<1x8x256xf32>
    %c0_17 = arith.constant 0 : index
    %c0_18 = arith.constant 0 : index
    %c0_19 = arith.constant 0 : index
    %22 = vector.load %arg4[%c0_17, %c0_18, %c0_19] : memref<1x8x256xf32, #tpu.memory_space<vmem>>, vector<1x8x256xf32>
    tpu.vector_store %arg4[%c0_17, %c0_18, %c0_19], %21 {strides = array<i32>} : memref<1x8x256xf32, #tpu.memory_space<vmem>>, vector<1x8x256xf32>,
    return
  }
  func.func @transform_0(%arg0: i32) -> (i32, i32, i32) {
    %c0_i32 = arith.constant 0 : i32
    %c0_i32_0 = arith.constant 0 : i32
    %c0_i32_1 = arith.constant 0 : i32
    return %arg0, %c0_i32, %c0_i32_0 : i32, i32, i32
  }
  func.func @transform_1(%arg0: i32) -> (i32, i32) {
    %c0_i32 = arith.constant 0 : i32
    %c0_i32_0 = arith.constant 0 : i32
    %c0_i32_1 = arith.constant 0 : i32
    return %c0_i32, %c0_i32_0 : i32, i32
  }
  func.func @transform_2(%arg0: i32) -> (i32, i32) {
    %c0_i32 = arith.constant 0 : i32
    %c0_i32_0 = arith.constant 0 : i32
    %c0_i32_1 = arith.constant 0 : i32
    return %c0_i32, %c0_i32_0 : i32, i32
  }
  func.func @transform_3(%arg0: i32) -> (i32, i32, i32) {
    %c0_i32 = arith.constant 0 : i32
    %c0_i32_0 = arith.constant 0 : i32
    %c0_i32_1 = arith.constant 0 : i32
    return %arg0, %c0_i32, %c0_i32_0 : i32, i32, i32
  }
}

</mosaic_0001>

<bundles_post_ra>
// kernel: tpu_custom_call.1
= control target key start
LH: loop header
LB: loop body
LE: loop exit
PB: predicated region body
PF: predicated region fallthrough
CT: control target
= control target key end

     0   :  { %8 = vsyncpa [#allocation3], 0  ;;  %s676_s0 = inlined_call_operand.hbm [shape: f32[2,8,256], index: 0, kind: input, shape index: {}]   ;;  %s677_s1 = inlined_call_operand.vmem [shape: f32[8,2], index: 1, kind: input, shape index: {}]   ;;  %s678_s2 = inlined_call_operand.vmem [shape: f32[2,8], index: 2, kind: input, shape index: {}]   ;;  %s679_s3 = inlined_call_operand.hbm [shape: f32[2,8,256], index: 3, kind: output, shape index: {}]  }
   0x1   :  { %10 = vsyncpa [#allocation3 + $0x1], 0 }
   0x2   :  { %11 = vsyncpa [#allocation4], 0 }
   0x3   :  { %13 = vsyncpa [#allocation4 + $0x1], 0  ;;  %s539_s12 = smov 0   ;;  %s541_s13 = smov 0  }
   0x4   :  { %s543_s14 = smov 0   ;;  %s545_s15 = smov 0  }
   0x5 LB: > { %s560_s16 = sadd.s32 4294967295, %s517_s15   ;;  %s355_s17 = sadd.s32 4294967294, %s517_s15   ;;  %s517_s15 = sphi %s545_s15, %s689_s15   ;;  %s513_s14 = sphi %s543_s14, %s688_s14   ;;  %s509_s13 = sphi %s541_s13, %s687_s13   ;;  %s505_s12 = sphi %s539_s12, %s686_s12  }
   0x6   : > { %s564_s18 = sadd.s32 1, %s517_s15   ;;  %s26_s19 = sadd.s32 1, %s513_s14 }
   0x7   : > { %s23_s20 = ssub.s32 %s517_s15, %s564_s18  ;;  %p33_p0 = scmp.ne.s32.totalorder %s513_s14, %s509_s13 }
   0x8   : > { %p24_p1 = scmp.eq.s32.totalorder %s23_s20, 0  ;;  %p34_p2 = scmp.eq.s32.totalorder %s517_s15, 0 }
   0x9   : > { %p39_p3 = scmp.ne.s32.totalorder %s509_s13, %s505_s12  ;;  %p40_p4 = scmp.eq.s32.totalorder %s560_s16, 0 }
   0xa   : > { %s576_s21 = scalar_select %p24_p1, %s513_s14, %s26_s19  }
   0xb   : > { %p578_p5 = por %p34_p2, %p33_p0  ;;  %p582_p6 = por %p40_p4, %p39_p3 }
   0xc   : > { %p105_p7 = scmp.eq.s32.totalorder %s560_s16, 1  ;;  %p111_p8 = scmp.eq.s32.totalorder %s355_s17, 1 }
   0xd   : > { %p386_p10 = scmp.lt.s32.totalorder %s517_s15, 2  ;;  %s137_s26 = sand.u32 1, %s513_s14  }
   0xe   : > { %p589_p11 = por %p105_p7, %p33_p0  ;;  %p593_p12 = por %p111_p8, %p39_p3 }
   0xf   : > { %s372_s27 = sshll.u32 %s517_s15, 4  ;;  %s358_s28 = sshll.u32 %s137_s26, 4 }
  0x10   : > { %s146_s4 = scalar_lea.hbm %s676_s0, %s372_s27  ;;  %s141_s6 = scalar_lea.vmem [#allocation2], %s358_s28 }
  0x11   : > { %s148_s5 = sshll.u32 %s146_s4, 4  ;;  %s150_s7 = sshll.u32 %s141_s6, 4  ;;  %s149_s5 = int_to_ptr.hbm [resolvable:$true] %s148_s5  ;;  %s151_s7 = int_to_ptr.vmem [resolvable:$true] %s150_s7 }
  0x12   : > { %p604_p13 = pnand %p386_p10, %p578_p5  ;;  %p361_p0 = scmp.ge.s32.totalorder %s517_s15, 1 }
  0x13   : > { %p155_p1 = scmp.lt.s32.totalorder %s517_s15, 3  ;;  %s138_s9 = scalar_lea.sflag [#allocation3], %s137_s26 }
  0x14   : > { %s421_s10 = sshra.s32 %s149_s5, 4  ;;  %p425_p3 = pneg %p604_p13  ;;  %s422_s10 = int_to_ptr.hbm [resolvable:$true] %s421_s10 }
  0x15   : > { %s423_s11 = scalar_lea.hbm %s422_s10, 16  ;;  %s428_s20 = scalar_lea.hbm %s676_s0, 32 }
  0x16   : > { %p424_p2 = scmp.ne.s32.totalorder %s422_s10, %s423_s11  ;;  %p429_p5 = scmp.lt.s32.totalorder %s422_s10, %s676_s0 }
  0x17   : > { %p430_p8 = scmp.lt.s32.totalorder %s428_s20, %s423_s11 }
  0x18   : > { %p426_p4 = pnand %p425_p3, %p424_p2 }
  0x19   : > { %p431_p10 = por %p430_p8, %p429_p5 }
  0x1a   : > { %p427_p7 = pneg %p426_p4 }
  0x1c   : > { %p432_p9 = pnand %p431_p10, %p427_p7 }
  0x1e   : > { %435 = shalt.err (!%p432_p9)
}
  0x1f   : > { %381 = dma.hbm_to_vmem [thread:$0]  (!%p604_p13), %s149_s5, 256, %s151_s7, %s138_s9  }
  0x20   : > { %p156_p2 = pnand %p361_p0, %p155_p1 }
  0x21   : > { %s625_s26 = sand.u32 (!%p156_p2), 1, %s509_s13  }
  0x22   : > { %159 = sbr.rel (%p156_p2) target bundleno = 548 (0x224), region = 32  ;;  %s362_s28 = sshll.u32 (!%p156_p2), %s625_s26, 4 }
  0x23   : > { %s162_s29 = scalar_lea.sflag (!%p156_p2), [#allocation3], %s625_s26  ;;  %s165_s30 = scalar_lea.vmem (!%p156_p2), [#allocation2], %s362_s28 }
  0x27   : > { %496 = dma.done.wait (%p582_p6), %s162_s29, 256  }
  0x28   : > { %498 = vsyncadd (%p582_p6), %s162_s29, 4294967040  ;;  %v189_v0 = vld [vmem:[%s165_s30] sm:$0xff]  ;;  %v190_v1 = vld [vmem:[%s165_s30 + $0x8] sm:$0xff]  ;;  %v197_v4 = vlaneseq  ;;  %vm200_vm0 = vcmask 64512   ;;  %vm229_vm1 = vcmask 1041408   ;;  %vm225_vm2 = vcmask 15360  }
  0x29   : > { %v191_v2 = vadd.f32 %v190_v1, %v189_v0  ;;  %v195_v3 = vld [vmem:[%s677_s1] sm:$0xff]  ;;  %s373_s23 = sshll.u32 %s560_s16, 4  ;;  %s188_s11 = scalar_lea.vmem [#allocation5], %s362_s28 }
  0x2a   : > { %218 = vmatpush.msra.mxu0 %v195_v3  ;;  %v198_v5 = vand.u32 127, %v197_v4  ;;  %v224_v9 = vld [vmem:[%s678_s2] sm:$0x3]  ;;  %v259_v12 = vshrl.u32 %v197_v4, 7  ;;  %s280_s10 = scalar_lea.hbm %s679_s3, %s373_s23  ;;  %s282_s17 = sshll.u32 %s188_s11, 4  ;;  %s283_s17 = int_to_ptr.vmem [resolvable:$true] %s282_s17 }
  0x2b   : > { %192 = vadd.xlane.f32.xlu0 %v191_v2  ;;  %365 = vmatpush.msk.msra.mxu1 %vm229_vm1, %v224_v9  ;;  %s284_s19 = sshll.u32 %s280_s10, 4  ;;  %s269_s20 = scalar_lea.sflag [#allocation4], %s625_s26  ;;  %s285_s19 = int_to_ptr.hbm [resolvable:$true] %s284_s19 }
  0x2c   : > { %420 = vset.pattern.permute.xlu0 %v259_v12  ;;  %s465_s22 = sshra.s32 %s285_s19, 4  ;;  %s471_s28 = scalar_lea.hbm %s679_s3, 32  ;;  %s466_s22 = int_to_ptr.hbm [resolvable:$true] %s465_s22 }
  0x2d   : > { %s467_s16 = scalar_lea.hbm %s466_s22, 16  ;;  %p472_p0 = scmp.lt.s32.totalorder %s466_s22, %s679_s3 }
  0x2e   : > { %p468_p6 = scmp.ne.s32.totalorder %s466_s22, %s467_s16  ;;  %p473_p1 = scmp.lt.s32.totalorder %s471_s28, %s467_s16 }
  0x30   : > { %p469_p9 = pnand %p468_p6, %p589_p11  ;;  %p474_p3 = por %p473_p1, %p472_p0 }
  0x32   : > { %p470_p13 = pneg %p469_p9 }
  0x34   : > { %p475_p4 = pnand %p474_p3, %p470_p13 }
  0x9e   : > { %v193_v6 = vpop.xlane.xlu0 %192 }
  0x9f   : > { %v194_v7 = vmul.f32 0.00390625, %v193_v6 }
  0xa1   : > { %v199_v8 = vperm.slane %v194_v7, %v198_v5 }
  0xa3   : > { %364 = vmatmul.msk.f32.vlgmr.msra.gmra.mxu0 %vm200_vm0, %v199_v8 }
 0x120   : > { %v220_v10 = vpop.f32.mrf.mxu0 }
 0x121   : > { %v223_v11 = vmax.f32 %v220_v10, 0.0 }
 0x123   : > { %366 = vmatmul.msk.f32.vlgmr.msra.gmra.mxu1 %vm225_vm2, %v223_v11 }
 0x1a0   : > { %v250_v13 = vpop.f32.mrf.mxu1 }
 0x1a1   : > { %v253_v14 = vmul.f32 0.16666667, %v250_v13 }
 0x1a3   : > { %v254_v15 = vadd.f32 0.5, %v253_v14 }
 0x1a5   : > { %v255_v16 = vmax.f32 %v254_v15, 0.0 }
 0x1a7   : > { %v256_v17 = vmin.f32 %v255_v16, 1.0 }
 0x1a9   : > { %v257_v18 = vperm.slane %v256_v17, 0 }
 0x1ab   : > { %262 = vperm.xlu0 %420, %v257_v18  }
 0x21d   : > { %v263_v19 = vpop.permute.xlu0 %262 }
 0x21e   : > { %v264_v20 = vmul.f32 %v263_v19, %v189_v0  ;;  %v265_v21 = vmul.f32 %v263_v19, %v190_v1 }
 0x220   : > { %266 = vst [vmem:[%s188_s11] sm:$0xff] %v264_v20 }
 0x221   : > { %267 = vst [vmem:[%s188_s11 + $0x8] sm:$0xff] %v265_v21 }
 0x222   : > { %478 = shalt.err (!%p475_p4)
}
 0x223   : > { %376 = dma.vmem_to_hbm [thread:$0]  (%p589_p11), %s283_s17, 256, %s285_s19, %s269_s20  }
 0x224 PF: > { %s296_s26 = sand.u32 1, %s505_s12   ;;  %p685_p7 = scmp.ge.s32.totalorder %s517_s15, 2 }
 0x225   : > { %s297_s5 = scalar_lea.sflag [#allocation4], %s296_s26 }
 0x226   : > { %p383_p5 = pnand %p685_p7, %p593_p12 }
 0x228   : > { %p384_p8 = pneg %p383_p5 }
 0x22a   : > { %500 = dma.done.wait (%p384_p8), %s297_s5, 256  }
 0x22b   : > { %502 = vsyncadd (%p384_p8), %s297_s5, 4294967040  ;;  %p16_p10 = scmp.ge.s32.totalorder %s564_s18, 4   ;;  %s686_s12 = smov %s509_s13 }
 0x22c   : > { %s687_s13 = smov %s513_s14  ;;  %s688_s14 = smov %s576_s21 }
 0x22d   : > { %s689_s15 = smov %s564_s18  ;;  %18 = sbr.rel (!%p16_p10) target bundleno = 5 (0x5), region = 77 }
 0x232   :  { %303 = vsyncpa [#allocation3], 1 }
 0x233   :  { %305 = vsyncpa [#allocation3 + $0x1], 1 }
 0x234   :  { %306 = vsyncpa [#allocation4], 1 }
 0x235   :  { %308 = vsyncpa [#allocation4 + $0x1], 1 }

</bundles_post_ra>
